<compile_context>
chip_gen: v5e
topology: v5e:2x2
jax: 0.10.0
libtpu: 0.0.40
codegen_flags: <defaults>
</compile_context>

<pallas_src>
import functools
import math

import jax
import jax.numpy as jnp
from jax import lax
from jax.experimental import pallas as pl
from jax.experimental.pallas import tpu as pltpu


def _round_up(x, m):
    return ((x + m - 1) // m) * m


def _single_buffered_spec(block_shape, index_map):
    """BlockSpec for a grid-invariant operand: request a single pipeline buffer.

    Double-buffering a block whose index_map is constant only wastes VMEM.  Falls back to
    a plain BlockSpec if this JAX build does not expose pipeline_mode / pl.Buffered.
    """
    buffered = getattr(pl, "Buffered", None)
    if buffered is not None:
        try:
            return pl.BlockSpec(block_shape, index_map, pipeline_mode=buffered(1))
        except TypeError:
            pass
    return pl.BlockSpec(block_shape, index_map)


# --------------------------------------------------------------------------------------
# Kernel
# --------------------------------------------------------------------------------------
def attention_block_kernel(x_ref, w_ref, b_ref, o_ref, *, compute_dtype, approx_recip):
    """One grid step = `block_b` batch elements of single-head attention.

    x_ref: (block_b, N, E)   w_ref: (E, 3*Hp)   b_ref: (1, 3*Hp)   o_ref: (block_b, N, Hp)
    Hp = H rounded up to a multiple of 128 lanes; pad lanes are exact zeros.
    """
    hp = o_ref.shape[-1]

    # ---- fused QKV projection directly on the 3-D block (no reshape round-trip) -------
    # MXU operands in compute_dtype (bf16 fast path), f32 accumulation; bias added in f32
    # after the matmul.  The 1/sqrt(H) scale is already folded into the Q slab.
    x = x_ref[...].astype(compute_dtype)
    w = w_ref[...].astype(compute_dtype)          # no-op when already compute_dtype
    qkv = lax.dot_general(x, w, dimension_numbers=(((2,), (0,)), ((), ())),
                          preferred_element_type=jnp.float32)        # (bb, N, 3*Hp)
    qkv = qkv + b_ref[...]                                           # f32 bias add

    # Contiguous, 128-aligned lane slices ([Wq | Wk | Wv] layout built in the wrapper).
    q = qkv[..., :hp].astype(compute_dtype)
    k = qkv[..., hp:2 * hp].astype(compute_dtype)
    v = qkv[..., 2 * hp:].astype(compute_dtype)

    # ---- attention scores: batched contraction over the head dim, no materialized k.T --
    wei = lax.dot_general(q, k, dimension_numbers=(((2,), (2,)), ((0,), (0,))),
                          preferred_element_type=jnp.float32)        # (bb, N, N)

    # Numerically-stable softmax along the key axis (kept in f32 — no bf16 VPU/EUP on v5e).
    m = jnp.max(wei, axis=-1, keepdims=True)
    p = jnp.exp(wei - m)
    s = jnp.sum(p, axis=-1, keepdims=True)
    att = p * pl.reciprocal(s, approx=approx_recip)

    # ---- output: (bb, N, N) @ (bb, N, Hp) -> (bb, N, Hp); lane-dense store -------------
    out = lax.dot_general(att.astype(compute_dtype), v,
                          dimension_numbers=(((2,), (1,)), ((0,), (0,))),
                          preferred_element_type=jnp.float32)
    o_ref[...] = out.astype(o_ref.dtype)


# --------------------------------------------------------------------------------------
# One-time parameter preparation (outside the hot path)
# --------------------------------------------------------------------------------------
def prepare_qkv_params(W, b, head_size, *, param_dtype=jnp.bfloat16):
    """De-interleave & fuse the torch nn.Linear(E, 3H) parameters — done ONCE.

    torch: y = x @ W.T + b with W: (3H, E); view(B,N,H,3).unbind(-1) means Q uses output
    columns 0::3, K uses 1::3, V uses 2::3.  Builds a single (E, 3*Hp) weight slab ordered
    [Wq | Wk | Wv], each zero-padded from H to Hp = round_up(H, 128) lanes, with the
    1/sqrt(H) softmax scale folded into the Q slab (weight and bias).  The weight is stored
    in `param_dtype` (bf16 default → native MXU operands + half the DMA bytes); the bias
    stays f32 and is added after the f32-accumulated matmul.
    """
    H = head_size
    Hp = _round_up(H, 128)
    scale = 1.0 / math.sqrt(float(H))
    W_t = W.T                                                    # (E, 3H)
    parts_w, parts_b = [], []
    for off, s in ((0, scale), (1, 1.0), (2, 1.0)):              # Q (scaled), K, V
        parts_w.append(jnp.pad(W_t[:, off::3] * s, ((0, 0), (0, Hp - H))))
        parts_b.append(jnp.pad(b[off::3] * s, (0, Hp - H)))
    w_fused = jnp.concatenate(parts_w, axis=1).astype(param_dtype)   # (E, 3*Hp)
    b_fused = jnp.concatenate(parts_b)[None, :].astype(jnp.float32)  # (1, 3*Hp)
    return w_fused, b_fused


# --------------------------------------------------------------------------------------
# Wrapper: block_b selection from a VMEM budget, then pallas_call
# --------------------------------------------------------------------------------------
def _estimate_vmem_bytes(bb, N, E, Hp, x_itemsize, w_itemsize, out_itemsize):
    """Per-grid-step VMEM estimate (bytes) for a candidate block_b."""
    const_bytes = E * 3 * Hp * w_itemsize + 3 * Hp * 4   # single-buffered weight + bias
    x_bytes = 2 * bb * N * E * x_itemsize                # x block, double-buffered
    out_bytes = 2 * bb * N * Hp * out_itemsize           # out block, double-buffered
    qkv_bytes = bb * N * 3 * Hp * 4                      # f32 projection intermediate
    score_bytes = 2 * bb * N * N * 4                     # f32 scores + softmax temps
    return const_bytes + x_bytes + out_bytes + qkv_bytes + score_bytes


def _pick_block_b(B, N, E, Hp, x_itemsize, w_itemsize, out_itemsize,
                  vmem_budget_bytes, target_steps, mxu_m_fill):
    divisors = [d for d in range(1, B + 1) if B % d == 0]
    est = lambda d: _estimate_vmem_bytes(d, N, E, Hp, x_itemsize, w_itemsize, out_itemsize)
    fitting = [d for d in divisors if est(d) <= vmem_budget_bytes] or [1]
    # Keep enough grid steps for DMA/compute overlap (and >= 2 for megacore sharding) ...
    steps_ok = [d for d in fitting if (B // d) >= min(target_steps, B)] or fitting
    # ... then the smallest block that already fills the MXU M dimension, if any.
    m_ok = [d for d in steps_ok if d * N >= mxu_m_fill]
    return m_ok[0] if m_ok else steps_ok[-1]


def attention_block(x, w_fused, b_fused, head_size, *,
                    block_b=None, compute_dtype=None, approx_recip=True,
                    vmem_budget_bytes=32 * 1024 * 1024, target_steps=4,
                    mxu_m_fill=256, slice_output=True):
    """x: (B, N, E); w_fused/b_fused from prepare_qkv_params().

    Returns (B, N, head_size) (or the lane-padded (B, N, Hp) buffer if slice_output=False,
    which saves the external slice pass when downstream can consume padded heads).
    """
    B, N, E = x.shape
    Hp = w_fused.shape[1] // 3
    if compute_dtype is None:
        compute_dtype = w_fused.dtype

    if block_b is None:
        block_b = _pick_block_b(B, N, E, Hp,
                                jnp.dtype(x.dtype).itemsize,
                                jnp.dtype(w_fused.dtype).itemsize,
                                jnp.dtype(x.dtype).itemsize,
                                vmem_budget_bytes, target_steps, mxu_m_fill)
    assert B % block_b == 0, "block_b must divide the batch"
    grid = (B // block_b,)

    est_bytes = _estimate_vmem_bytes(block_b, N, E, Hp,
                                     jnp.dtype(x.dtype).itemsize,
                                     jnp.dtype(w_fused.dtype).itemsize,
                                     jnp.dtype(x.dtype).itemsize)
    # Explicit scoped-VMEM limit (v5e default is only 16 MiB of 128 MiB physical); keep it
    # within v7x's 64 MiB physical per-TC VMEM.
    vmem_limit_bytes = int(min(60 * 1024 * 1024, max(32 * 1024 * 1024, 2 * est_bytes)))

    kernel = functools.partial(attention_block_kernel,
                               compute_dtype=compute_dtype, approx_recip=approx_recip)

    out_padded = pl.pallas_call(
        kernel,
        out_shape=jax.ShapeDtypeStruct((B, N, Hp), x.dtype),
        grid_spec=pltpu.PrefetchScalarGridSpec(
            num_scalar_prefetch=0,
            grid=grid,
            in_specs=[
                pl.BlockSpec((block_b, N, E), lambda i: (i, 0, 0)),
                # Grid-invariant params: DMA'd once, single pipeline buffer.
                _single_buffered_spec((E, 3 * Hp), lambda i: (0, 0)),
                _single_buffered_spec((1, 3 * Hp), lambda i: (0, 0)),
            ],
            out_specs=pl.BlockSpec((block_b, N, Hp), lambda i: (i, 0, 0)),
        ),
        compiler_params=pltpu.CompilerParams(
            dimension_semantics=("parallel",),
            vmem_limit_bytes=vmem_limit_bytes),
    )(x, w_fused, b_fused)

    if slice_output and Hp != head_size:
        return out_padded[..., :head_size]
    return out_padded


# --------------------------------------------------------------------------------------
# Pure-JAX reference mirroring the PyTorch forward exactly
# --------------------------------------------------------------------------------------
def attention_block_ref(x, W, b, head_size):
    qkv = jnp.einsum("bne,oe->bno", x, W) + b              # (B, N, 3H)
    B, N, emb = qkv.shape
    qkv = qkv.reshape(B, N, emb // 3, 3)
    Q, K, V = qkv[..., 0], qkv[..., 1], qkv[..., 2]
    wei = jnp.einsum("bnh,bmh->bnm", Q, K) / math.sqrt(head_size)
    wei = jax.nn.softmax(wei, axis=-1)
    return jnp.einsum("bnm,bmh->bnh", wei, V)


if __name__ == "__main__":
    B, N, E, H = 2, 8, 32, 16   # batch, seq, embeddings, head_size

    key = jax.random.PRNGKey(0)
    kx, kw, kb = jax.random.split(key, 3)

    x = jax.random.normal(kx, (B, N, E), dtype=jnp.float32)
    # Deterministic parameter init (shapes match nn.Linear(E, 3*H, bias=True)).
    bound = 1.0 / math.sqrt(E)
    W = jax.random.uniform(kw, (3 * H, E), dtype=jnp.float32, minval=-bound, maxval=bound)
    b = jax.random.uniform(kb, (3 * H,), dtype=jnp.float32, minval=-bound, maxval=bound)

    ref = attention_block_ref(x, W, b, H)

    # Strict path: f32 params + f32 MXU operands + exact reciprocal -> matches torch math.
    w32, b32 = prepare_qkv_params(W, b, H, param_dtype=jnp.float32)
    out = attention_block(x, w32, b32, H, compute_dtype=jnp.float32, approx_recip=False)
    out = jax.block_until_ready(out)
    assert out.shape == (B, N, H)
    assert jnp.allclose(out, ref, atol=1e-5, rtol=1e-5), "f32 path mismatch vs reference"

    # Fast path (default): bf16 params & MXU operands, f32 accumulation, EUP approx recip.
    w_bf, b_bf = prepare_qkv_params(W, b, H)               # param_dtype=bf16
    out_fast = jax.block_until_ready(attention_block(x, w_bf, b_bf, H))
    assert out_fast.shape == (B, N, H)
    assert jnp.allclose(out_fast, ref, atol=2e-2, rtol=2e-2), "bf16 path mismatch vs reference"

    print("KERNEL_OK")
</pallas_src>

<mosaic_0001>
module attributes {stable_mosaic.version = 11 : i64} {
  func.func @attention_block_kernel(%arg0: i32, %arg1: memref<1x8x32xf32, #tpu.memory_space<vmem>>, %arg2: memref<32x384xf32, #tpu.memory_space<vmem>>, %arg3: memref<1x384xf32, #tpu.memory_space<vmem>>, %arg4: memref<1x8x128xf32, #tpu.memory_space<vmem>>) attributes {dimension_semantics = [#tpu.dimension_semantics<parallel>], iteration_bounds = array<i64: 2>, scalar_prefetch = 0 : i64, scratch_operands = 0 : i64, tpu.core_type = #tpu.core_type<tc>, window_params = [{transform_indices = @transform_0, window_bounds = array<i64: 1, 8, 32>}, {pipeline_mode = #tpu.pipeline_mode<synchronous>, transform_indices = @transform_1, window_bounds = array<i64: 32, 384>}, {pipeline_mode = #tpu.pipeline_mode<synchronous>, transform_indices = @transform_2, window_bounds = array<i64: 1, 384>}, {transform_indices = @transform_3, window_bounds = array<i64: 1, 8, 128>}]} {
    %c0 = arith.constant 0 : index
    %c0_0 = arith.constant 0 : index
    %c0_1 = arith.constant 0 : index
    %0 = vector.load %arg1[%c0, %c0_0, %c0_1] : memref<1x8x32xf32, #tpu.memory_space<vmem>>, vector<1x8x32xf32>
    %c0_2 = arith.constant 0 : index
    %c0_3 = arith.constant 0 : index
    %1 = vector.load %arg2[%c0_2, %c0_3] : memref<32x384xf32, #tpu.memory_space<vmem>>, vector<32x384xf32>
    %cst = arith.constant dense<0.000000e+00> : vector<1x8x384xf32>
    %2 = tpu.matmul %0, %1, %cst {dimension_numbers = #tpu.dot_dimension_numbers<[2], [0], [0, 1], [1], [0, 0, 0, 1, 1, 1], [], []>} : vector<1x8x32xf32>, vector<32x384xf32>, vector<1x8x384xf32> -> vector<1x8x384xf32>
    %c0_4 = arith.constant 0 : index
    %c0_5 = arith.constant 0 : index
    %3 = vector.load %arg3[%c0_4, %c0_5] : memref<1x384xf32, #tpu.memory_space<vmem>>, vector<1x384xf32>
    %4 = vector.shape_cast %3 : vector<1x384xf32> to vector<1x1x384xf32>
    %5 = vector.broadcast %4 : vector<1x1x384xf32> to vector<1x8x384xf32>
    %6 = arith.addf %2, %5 : vector<1x8x384xf32>
    %7 = vector.extract_strided_slice %6 {offsets = [0, 0, 0], sizes = [1, 8, 128], strides = [1, 1, 1]} : vector<1x8x384xf32> to vector<1x8x128xf32>
    %8 = vector.extract_strided_slice %6 {offsets = [0, 0, 128], sizes = [1, 8, 128], strides = [1, 1, 1]} : vector<1x8x384xf32> to vector<1x8x128xf32>
    %9 = vector.extract_strided_slice %6 {offsets = [0, 0, 256], sizes = [1, 8, 128], strides = [1, 1, 1]} : vector<1x8x384xf32> to vector<1x8x128xf32>
    %cst_6 = arith.constant dense<0.000000e+00> : vector<1x8x8xf32>
    %10 = tpu.matmul %7, %8, %cst_6 {dimension_numbers = #tpu.dot_dimension_numbers<[2], [2], [1], [1], [0, 0, 0, 1, 1, 1], [0], [0]>} : vector<1x8x128xf32>, vector<1x8x128xf32>, vector<1x8x8xf32> -> vector<1x8x8xf32>
    %cst_7 = arith.constant dense<0xFF800000> : vector<1x8xf32>
    %11 = vector.multi_reduction <maximumf>, %10, %cst_7 [2] : vector<1x8x8xf32> to vector<1x8xf32>
    %12 = vector.shape_cast %11 : vector<1x8xf32> to vector<1x8x1xf32>
    %13 = vector.broadcast %12 : vector<1x8x1xf32> to vector<1x8x8xf32>
    %14 = arith.subf %10, %13 : vector<1x8x8xf32>
    %15 = math.exp %14 : vector<1x8x8xf32>
    %cst_8 = arith.constant dense<0.000000e+00> : vector<1x8xf32>
    %16 = vector.multi_reduction <add>, %15, %cst_8 [2] : vector<1x8x8xf32> to vector<1x8xf32>
    %17 = vector.shape_cast %16 : vector<1x8xf32> to vector<1x8x1xf32>
    %18 = tpu.reciprocal %17 : vector<1x8x1xf32> -> vector<1x8x1xf32>
    %19 = vector.broadcast %18 : vector<1x8x1xf32> to vector<1x8x8xf32>
    %20 = arith.mulf %15, %19 : vector<1x8x8xf32>
    %cst_9 = arith.constant dense<0.000000e+00> : vector<1x8x128xf32>
    %21 = tpu.matmul %20, %9, %cst_9 {dimension_numbers = #tpu.dot_dimension_numbers<[2], [1], [1], [2], [0, 0, 0, 1, 1, 2], [0], [0]>} : vector<1x8x8xf32>, vector<1x8x128xf32>, vector<1x8x128xf32> -> vector<1x8x128xf32>
    %c0_10 = arith.constant 0 : index
    %c0_11 = arith.constant 0 : index
    %c0_12 = arith.constant 0 : index
    %22 = vector.load %arg4[%c0_10, %c0_11, %c0_12] : memref<1x8x128xf32, #tpu.memory_space<vmem>>, vector<1x8x128xf32>
    tpu.vector_store %arg4[%c0_10, %c0_11, %c0_12], %21 {strides = array<i32>} : memref<1x8x128xf32, #tpu.memory_space<vmem>>, vector<1x8x128xf32>,
    return
  }
  func.func @transform_0(%arg0: i32) -> (i32, i32, i32) {
    %c0_i32 = arith.constant 0 : i32
    %c0_i32_0 = arith.constant 0 : i32
    %c0_i32_1 = arith.constant 0 : i32
    return %arg0, %c0_i32, %c0_i32_0 : i32, i32, i32
  }
  func.func @transform_1(%arg0: i32) -> (i32, i32) {
    %c0_i32 = arith.constant 0 : i32
    %c0_i32_0 = arith.constant 0 : i32
    %c0_i32_1 = arith.constant 0 : i32
    return %c0_i32, %c0_i32_0 : i32, i32
  }
  func.func @transform_2(%arg0: i32) -> (i32, i32) {
    %c0_i32 = arith.constant 0 : i32
    %c0_i32_0 = arith.constant 0 : i32
    %c0_i32_1 = arith.constant 0 : i32
    return %c0_i32, %c0_i32_0 : i32, i32
  }
  func.func @transform_3(%arg0: i32) -> (i32, i32, i32) {
    %c0_i32 = arith.constant 0 : i32
    %c0_i32_0 = arith.constant 0 : i32
    %c0_i32_1 = arith.constant 0 : i32
    return %arg0, %c0_i32, %c0_i32_0 : i32, i32, i32
  }
}

</mosaic_0001>

<bundles_post_ra>
// kernel: tpu_custom_call.1
= control target key start
LH: loop header
LB: loop body
LE: loop exit
PB: predicated region body
PF: predicated region fallthrough
CT: control target
= control target key end

     0   :  { %8 = vsyncpa [#allocation3], 0  ;;  %s912_s0 = inlined_call_operand.hbm [shape: f32[2,8,32], index: 0, kind: input, shape index: {}]   ;;  %s913_s1 = inlined_call_operand.hbm [shape: f32[32,384], index: 1, kind: input, shape index: {}]   ;;  %s914_s2 = inlined_call_operand.hbm [shape: f32[1,384], index: 2, kind: input, shape index: {}]   ;;  %s915_s3 = inlined_call_operand.hbm [shape: f32[2,8,128], index: 3, kind: output, shape index: {}]  }
   0x1   :  { %10 = vsyncpa [#allocation3 + $0x1], 0 }
   0x2   :  { %11 = vsyncpa [#allocation6], 0 }
   0x3   :  { %12 = vsyncpa [#allocation4], 0 }
   0x4   :  { %14 = vsyncpa [#allocation4 + $0x1], 0  ;;  %s757_s12 = smov 0   ;;  %s759_s13 = smov 0  }
   0x5   :  { %s761_s14 = smov 0   ;;  %s763_s15 = smov 0  }
   0x6 LB: > { %s130_s18 = sshll.u32 %s913_s1, 4  ;;  %s781_s19 = sadd.s32 4294967295, %s731_s15   ;;  %s731_s15 = sphi %s763_s15, %s926_s15   ;;  %s727_s14 = sphi %s761_s14, %s925_s14   ;;  %s723_s13 = sphi %s759_s13, %s924_s13   ;;  %s719_s12 = sphi %s757_s12, %s923_s12   ;;  %s131_s18 = int_to_ptr.hbm [resolvable:$true] %s130_s18 }
   0x7   : > { %p479_p0 = scmp.ge.s32.totalorder %s731_s15, 1  ;;  %p41_p1 = scmp.eq.s32.totalorder %s781_s19, 0 }
   0x8   : > { %p119_p2 = scmp.lt.s32.totalorder %s731_s15, 3  ;;  %s733_s21 = smov [#allocation5]  }
   0x9   : > { %s132_s22 = sshll.u32 %s733_s21, 4  ;;  %s145_s25 = sshll.u32 %s914_s2, 4  ;;  %s133_s22 = int_to_ptr.vmem [resolvable:$true] %s132_s22  ;;  %s146_s25 = int_to_ptr.hbm [resolvable:$true] %s145_s25 }
   0xa   : > { %p786_p3 = pnand %p479_p0, %p119_p2  ;;  %s734_s26 = smov [#allocation7]  }
   0xb   : > { %s147_s27 = sshll.u32 %s734_s26, 4  ;;  %s735_s28 = smov 384   ;;  %s148_s27 = int_to_ptr.vmem [resolvable:$true] %s147_s27 }
   0xc   : > { %p510_p4 = pneg %p786_p3  ;;  %s736_s29 = smov 24  }
   0xd   : > { %s478_s30 = sadd.s32 4294967294, %s731_s15   ;;  %s800_s4 = sadd.s32 1, %s731_s15  }
   0xe   : > { %p511_p6 = pnand %p510_p4, %p41_p1  ;;  %s24_s5 = ssub.s32 %s731_s15, %s800_s4 }
   0xf   : > { %s27_s6 = sadd.s32 1, %s727_s14  ;;  %p25_p7 = scmp.eq.s32.totalorder %s24_s5, 0 }
  0x10   : > { %513 = dma.hbm_to_vmem [thread:$0]  (!%p511_p6), %s131_s18, 1536, %s133_s22, [#allocation6], %s735_s28, %s735_s28, %s736_s29  }
  0x11   : > { %516 = dma.hbm_to_vmem [thread:$0]  (!%p511_p6), %s146_s25, 48, %s148_s27, [#allocation6]  }
  0x12   : > { %p34_p8 = scmp.ne.s32.totalorder %s727_s14, %s723_s13  ;;  %p35_p9 = scmp.eq.s32.totalorder %s731_s15, 0 }
  0x13   : > { %p40_p10 = scmp.ne.s32.totalorder %s723_s13, %s719_s12  ;;  %p106_p13 = scmp.eq.s32.totalorder %s781_s19, 1 }
  0x14   : > { %s811_s7 = scalar_select %p25_p7, %s727_s14, %s27_s6  }
  0x15   : > { %p813_p11 = por %p35_p9, %p34_p8  ;;  %p819_p12 = por %p41_p1, %p40_p10 }
  0x16   : > { %p112_p0 = scmp.eq.s32.totalorder %s478_s30, 1  ;;  %p527_p2 = scmp.lt.s32.totalorder %s731_s15, 2 }
  0x17   : > { %s158_s10 = sand.u32 1, %s727_s14   ;;  %p826_p4 = por %p106_p13, %p34_p8 }
  0x18   : > { %p830_p6 = por %p112_p0, %p40_p10  ;;  %s483_s17 = sshll.u32 %s158_s10, 3 }
  0x19   : > { %s484_s18 = sshll.u32 %s731_s15, 3  ;;  %s162_s24 = scalar_lea.vmem [#allocation2], %s483_s17 }
  0x1a   : > { %s166_s23 = scalar_lea.hbm %s912_s0, %s484_s18  ;;  %s170_s25 = sshll.u32 %s162_s24, 4  ;;  %s171_s25 = int_to_ptr.vmem [resolvable:$true] %s170_s25 }
  0x1b   : > { %s168_s26 = sshll.u32 %s166_s23, 4  ;;  %p840_p7 = pnand %p527_p2, %p813_p11  ;;  %s169_s26 = int_to_ptr.hbm [resolvable:$true] %s168_s26 }
  0x1c   : > { %s159_s28 = scalar_lea.sflag [#allocation3], %s158_s10  ;;  %s631_s29 = sshra.s32 %s169_s26, 4  ;;  %s632_s29 = int_to_ptr.hbm [resolvable:$true] %s631_s29 }
  0x1d   : > { %s633_s30 = scalar_lea.hbm %s632_s29, 8  ;;  %p635_p9 = pneg %p840_p7 }
  0x1e   : > { %p634_p8 = scmp.ne.s32.totalorder %s632_s29, %s633_s30  ;;  %s638_s17 = scalar_lea.hbm %s912_s0, 16 }
  0x1f   : > { %p639_p11 = scmp.lt.s32.totalorder %s632_s29, %s912_s0  ;;  %p640_p0 = scmp.lt.s32.totalorder %s638_s17, %s633_s30 }
  0x20   : > { %p636_p10 = pnand %p635_p9, %p634_p8 }
  0x21   : > { %p641_p2 = por %p640_p0, %p639_p11 }
  0x22   : > { %p637_p13 = pneg %p636_p10 }
  0x24   : > { %p642_p5 = pnand %p641_p2, %p637_p13 }
  0x26   : > { %645 = shalt.err (!%p642_p5)
}
  0x27   : > { %520 = dma.hbm_to_vmem [thread:$0]  (!%p840_p7), %s169_s26, 128, %s171_s25, %s159_s28  }
  0x28   : > { %179 = sbr.rel (%p786_p3) target bundleno = 718 (0x2ce), region = 32  ;;  %s857_s10 = sand.u32 (!%p786_p3), 1, %s723_s13  }
  0x29   : > { %s486_s21 = sshll.u32 (!%p786_p3), %s857_s10, 3  ;;  %s182_s22 = scalar_lea.sflag (!%p786_p3), [#allocation3], %s857_s10 }
  0x2a   : > { %s185_s23 = scalar_lea.vmem (!%p786_p3), [#allocation2], %s486_s21 }
  0x2d   : > { %706 = dma.done.wait (%p819_p12), %s182_s22, 128  }
  0x2e   : > { %708 = vsyncadd (%p819_p12), %s182_s22, 4294967168 }
  0x2f   : > { %710 = dma.done.wait (%p41_p1), [#allocation6], 1584  }
  0x30   : > { %712 = vsyncadd (%p41_p1), [#allocation6], 4294965712  ;;  %v230_v0 = vld [vmem:[#allocation5 + $0x50] sm:$0xff]  ;;  %v227_v1 = vld [vmem:[#allocation5 + $0x38] sm:$0xff]  ;;  %vm240_vm0 = vcmask 261120   ;;  %vm324_vm1 = vcmask 64512  }
  0x31   : > { %v229_v2 = vld [vmem:[#allocation5 + $0x48] sm:$0xff]  ;;  %276 = vmatpush.msra.mxu1 %v230_v0  ;;  %v226_v3 = vld [vmem:[#allocation5 + $0x30] sm:$0xff]  ;;  %v224_v4 = vld [vmem:[#allocation5 + $0x20] sm:$0xff]  ;;  %s495_s20 = sshll.u32 %s781_s19, 3  ;;  %s218_s26 = scalar_lea.vmem [#allocation8], %s486_s21 }
  0x32   : > { %256 = vmatpush.msra.mxu0 %v229_v2  ;;  %v223_v5 = vld [vmem:[#allocation5 + $0x18] sm:$0xff]  ;;  %v221_v6 = vld [vmem:[#allocation5 + $0x8] sm:$0xff]  ;;  %v220_v7 = vld [vmem:[#allocation5] sm:$0xff]  ;;  %s384_s25 = scalar_lea.hbm %s915_s3, %s495_s20  ;;  %s386_s27 = sshll.u32 %s218_s26, 4  ;;  %s387_s27 = int_to_ptr.vmem [resolvable:$true] %s386_s27 }
  0x33   : > { %277 = vmatpush.msra.mxu1 %v227_v1  ;;  %v219_v8 = vld [vmem:[%s185_s23] sm:$0xff]  ;;  %v232_v9 = vld [vmem:[#allocation7] sm:$0x7]  ;;  %v225_v20 = vld [vmem:[#allocation5 + $0x28] sm:$0xff]  ;;  %s388_s28 = sshll.u32 %s384_s25, 4  ;;  %s374_s29 = scalar_lea.sflag [#allocation4], %s857_s10  ;;  %s389_s28 = int_to_ptr.hbm [resolvable:$true] %s388_s28 }
  0x34   : > { %257 = vmatpush.msra.mxu0 %v226_v3  ;;  %v235_v10 = vperm.slane %v232_v9, 1  ;;  %v234_v11 = vperm.slane %v232_v9, 0  ;;  %v231_v16 = vld [vmem:[#allocation5 + $0x58] sm:$0xff]  ;;  %v228_v19 = vld [vmem:[#allocation5 + $0x40] sm:$0xff]  ;;  %v222_v21 = vld [vmem:[#allocation5 + $0x10] sm:$0xff]  ;;  %v236_v27 = vperm.slane %v232_v9, 2 }
  0x35   : > { %278 = vmatpush.msra.mxu1 %v224_v4  ;;  %296 = vmatpush.msra.mxu2 %v231_v16  ;;  %s675_s30 = sshra.s32 %s389_s28, 4  ;;  %s681_s17 = scalar_lea.hbm %s915_s3, 16  ;;  %s676_s30 = int_to_ptr.hbm [resolvable:$true] %s675_s30 }
  0x36   : > { %258 = vmatpush.msra.mxu0 %v223_v5  ;;  %s677_s5 = scalar_lea.hbm %s676_s30, 8  ;;  %p682_p12 = scmp.lt.s32.totalorder %s676_s30, %s915_s3 }
  0x37   : > { %279 = vmatpush.msra.mxu1 %v221_v6  ;;  %297 = vmatpush.msra.mxu2 %v228_v19  ;;  %p678_p1 = scmp.ne.s32.totalorder %s676_s30, %s677_s5  ;;  %p683_p7 = scmp.lt.s32.totalorder %s681_s17, %s677_s5 }
  0x38   : > { %259 = vmatpush.msra.mxu0 %v220_v7  ;;  %491 = vmatmul.msk.f32.vlgmr.msra.gmra.mxu1 %vm240_vm0, %v219_v8 }
  0x39   : > { %490 = vmatmul.msk.f32.vlgmr.msra.gmra.mxu0 %vm240_vm0, %v219_v8  ;;  %298 = vmatpush.msra.mxu2 %v225_v20  ;;  %p679_p3 = pnand %p678_p1, %p826_p4  ;;  %p684_p8 = por %p683_p7, %p682_p12 }
  0x3b   : > { %299 = vmatpush.msra.mxu2 %v222_v21  ;;  %p680_p5 = pneg %p679_p3 }
  0x3c   : > { %492 = vmatmul.msk.f32.vlgmr.msra.gmra.mxu2 %vm240_vm0, %v219_v8 }
  0x3d   : > { %p685_p9 = pnand %p684_p8, %p680_p5 }
  0xb5   : > { %v281_v12 = vpop.f32.mrf.mxu1 }
  0xb6   : > { %v261_v13 = vpop.f32.mrf.mxu0  ;;  %v282_v14 = vadd.f32 %v281_v12, %v235_v10 }
  0xb7   : > { %v262_v15 = vadd.f32 %v261_v13, %v234_v11 }
  0xb8   : > { %319 = vmatpush.xpose.msra.mxu3 %v282_v14 }
  0xbb   : > { %320 = vmatmul.f32.vlgmr.msra.gmra.mxu3 %v262_v15 }
  0xbf   : > { %v301_v28 = vpop.f32.mrf.mxu2 }
  0xc0   : > { %v302_v29 = vadd.f32 %v301_v28, %v236_v27 }
  0xc2   : > { %367 = vmatpush.msrb.mxu3 %v302_v29 }
 0x13e   : > { %v321_v17 = vpop.f32.mrf.mxu3 }
 0x13f   : > { %v325_v18 = vsel %vm324_vm1, %v321_v17, -inf }
 0x140   : > { %326 = vmax.xlane.f32.xlu0 %v325_v18 }
 0x1b3   : > { %v327_v22 = vpop.xlane.xlu0 %326 }
 0x1b4   : > { %v328_v23 = vsub.f32 %v321_v17, %v327_v22 }
 0x1b6   : > { %v329_v24 = vmul.f32 1.442695, %v328_v23 }
 0x1b8   : > { %567 = vpow2.f32 %v329_v24 }
 0x1be   : > { %v568_v25 = vpop.eup %567 }
 0x1bf   : > { %v331_v26 = vsel %vm324_vm1, %v568_v25, 0.0 }
 0x1c0   : > { %332 = vadd.xlane.f32.xlu0 %v331_v26 }
 0x233   : > { %v333_v30 = vpop.xlane.xlu0 %332 }
 0x234   : > { %569 = vrcp.f32 %v333_v30  ;;  %v345_v34 = vand.u32 2147483648, %v333_v30  ;;  %v343_v36 = vand.u32 2147483647, %v333_v30  ;;  %vm339_vm3 = vweird.f32 %v333_v30 }
 0x236   : > { %v346_v38 = vor.u32 1.1754944e-38, %v345_v34  ;;  %vm344_vm5 = vcmp.eq.f32.partialorder %v343_v36, 8.507059e+37 }
 0x23a   : > { %v570_v31 = vpop.eup %569 }
 0x23b   : > { %v335_v32 = vmul.f32 %v570_v31, %v333_v30  ;;  %vm340_vm2 = vweird.f32 %v570_v31 }
 0x23c   : > { %vm341_vm4 = vmor %vm339_vm3, %vm340_vm2 }
 0x23d   : > { %v336_v33 = vsub.f32 1.0, %v335_v32 }
 0x23f   : > { %v337_v35 = vmul.f32 %v570_v31, %v336_v33 }
 0x241   : > { %v338_v37 = vadd.f32 %v570_v31, %v337_v35 }
 0x243   : > { %v342_v39 = vsel %vm341_vm4, %v570_v31, %v338_v37 }
 0x244   : > { %v347_v40 = vsel %vm344_vm5, %v346_v38, %v342_v39 }
 0x245   : > { %v348_v41 = vmul.f32 %v568_v25, %v347_v40 }
 0x247   : > { %493 = vmatmul.msk.f32.vlgmr.msrb.gmra.mxu3 %vm324_vm1, %v348_v41 }
 0x2ca   : > { %v369_v42 = vpop.f32.mrf.mxu3 }
 0x2cb   : > { %372 = vst [vmem:[%s218_s26] sm:$0xff] %v369_v42 }
 0x2cc   : > { %688 = shalt.err (!%p685_p9)
}
 0x2cd   : > { %508 = dma.vmem_to_hbm [thread:$0]  (%p826_p4), %s387_s27, 128, %s389_s28, %s374_s29  }
 0x2ce PF: > { %s400_s10 = sand.u32 1, %s719_s12   ;;  %p922_p10 = scmp.ge.s32.totalorder %s731_s15, 2 }
 0x2cf   : > { %s401_s21 = scalar_lea.sflag [#allocation4], %s400_s10 }
 0x2d0   : > { %p522_p13 = pnand %p922_p10, %p830_p6 }
 0x2d2   : > { %p523_p11 = pneg %p522_p13 }
 0x2d4   : > { %714 = dma.done.wait (%p523_p11), %s401_s21, 128  }
 0x2d5   : > { %716 = vsyncadd (%p523_p11), %s401_s21, 4294967168  ;;  %p17_p0 = scmp.ge.s32.totalorder %s800_s4, 4   ;;  %s923_s12 = smov %s723_s13 }
 0x2d6   : > { %s924_s13 = smov %s727_s14  ;;  %s925_s14 = smov %s811_s7 }
 0x2d7   : > { %s926_s15 = smov %s800_s4  ;;  %19 = sbr.rel (!%p17_p0) target bundleno = 6 (0x6), region = 85 }
 0x2dc   :  { %407 = vsyncpa [#allocation3], 1 }
 0x2dd   :  { %409 = vsyncpa [#allocation3 + $0x1], 1 }
 0x2de   :  { %410 = vsyncpa [#allocation6], 1 }
 0x2df   :  { %411 = vsyncpa [#allocation4], 1 }
 0x2e0   :  { %413 = vsyncpa [#allocation4 + $0x1], 1 }

</bundles_post_ra>
